<compile_context>
chip_gen: v6e
topology: v6e:2x2x1
jax: 0.10.0
libtpu: 0.0.40
codegen_flags: <defaults>
</compile_context>

<pallas_src>
import functools

import jax
import jax.numpy as jnp
from jax.experimental import pallas as pl
from jax.experimental.pallas import tpu as pltpu


def _default_block_bytes():
    """Per-input block-size target derived from the chip's VMEM capacity.

    2 inputs x 2 pipeline buffers -> keep resident input VMEM ~= capacity/4.
    (128 MiB VMEM -> 8 MiB blocks on v5e/v6e; 64 MiB -> 4 MiB blocks on v7x.)
    """
    try:
        info = pltpu.get_tpu_info()
        vmem = getattr(info, "vmem_capacity_bytes", None)
        if vmem:
            return max(1 << 20, int(vmem) // 16)
    except Exception:
        pass
    return 4 << 20


def _pick_tile_rows(m_rows, n_cols, itemsize, target_bytes):
    """Pick a sublane-aligned (multiple-of-8) row-tile close to target_bytes."""
    row_bytes = max(1, n_cols * itemsize)
    target_rows = max(8, (target_bytes // row_bytes) // 8 * 8)
    m8 = -(-m_rows // 8) * 8  # M rounded up to a sublane multiple
    if m8 <= target_rows:
        return m8                         # whole (padded) slab in one block
    if m_rows == m8:                      # already aligned: try an exact divisor
        lo = max(8, target_rows // 2)
        for cand in range(target_rows, lo - 1, -8):
            if m_rows % cand == 0:
                return cand
    return target_rows                    # tail block will be padded


def _stft_mag_loss_kernel(x_ref, y_ref, o_ref, *, log, log_eps, log_fac,
                          distance):
    # Stream the native dtype in; do all math in f32 on the VPU/EUP.
    x = x_ref[...].astype(jnp.float32)
    y = y_ref[...].astype(jnp.float32)

    if log:
        if log_eps == 0.0:
            # log(fac*x) - log(fac*y) == log(x / y): one EUP log instead of two.
            d = jnp.log(x / y)
        else:
            fac = jnp.float32(log_fac)
            eps = jnp.float32(log_eps)
            d = jnp.log(fac * x + eps) - jnp.log(fac * y + eps)
    else:
        d = x - y

    e = jnp.abs(d) if distance == "L1" else d * d

    # Fold the (tm, N) tile onto an (8, N) sublane/lane-aligned partial sum
    # with pure VPU adds; the cheap cross-lane reduce happens outside.
    tm, tn = e.shape
    o_ref[...] = e.reshape(tm // 8, 8, tn).sum(axis=0)


def stft_magnitude_loss(x_mag, y_mag, *, log=True, log_eps=0.0, log_fac=1.0,
                        distance="L1", reduction="mean", block_bytes=None):
    if distance not in ("L1", "L2"):
        raise ValueError(f"Invalid distance: '{distance}'.")
    if reduction not in ("mean", "sum"):
        # TODO(synk): reduction='none' (unreduced elementwise output) not implemented.
        raise ValueError(f"Unsupported reduction: '{reduction}'.")
    assert x_mag.shape == y_mag.shape
    total_elems = x_mag.size

    # Flatten to a lane-dense 2-D slab (M, N); keep the NATIVE dtype.
    n = x_mag.shape[-1]
    x2 = x_mag.reshape(-1, n)
    y2 = y_mag.reshape(-1, n)
    m = x2.shape[0]

    itemsize = jnp.dtype(x_mag.dtype).itemsize
    if block_bytes is None:
        block_bytes = _default_block_bytes()
    tm = _pick_tile_rows(m, n, itemsize, block_bytes)
    grid_m = -(-m // tm)
    m_full = grid_m * tm
    if m_full != m:
        # Pad both inputs with identical rows -> zero contribution to the loss.
        pad = ((0, m_full - m), (0, 0))
        x2 = jnp.pad(x2, pad, constant_values=1.0)
        y2 = jnp.pad(y2, pad, constant_values=1.0)

    kernel = functools.partial(
        _stft_mag_loss_kernel,
        log=log, log_eps=float(log_eps), log_fac=float(log_fac),
        distance=distance)

    # VMEM budget: 2 inputs x 2 buffers x block + double-buffered output + margin.
    block_in_bytes = tm * n * itemsize
    out_block_bytes = 8 * n * 4
    vmem_needed = 4 * block_in_bytes + 2 * out_block_bytes + (2 << 20)
    vmem_limit = int(max(vmem_needed, 32 << 20))

    partials = pl.pallas_call(
        kernel,
        out_shape=jax.ShapeDtypeStruct((grid_m * 8, n), jnp.float32),
        grid_spec=pltpu.PrefetchScalarGridSpec(
            num_scalar_prefetch=0,
            grid=(grid_m,),
            in_specs=[
                pl.BlockSpec((tm, n), lambda i: (i, 0)),
                pl.BlockSpec((tm, n), lambda i: (i, 0)),
            ],
            out_specs=pl.BlockSpec((8, n), lambda i: (i, 0)),
        ),
        compiler_params=pltpu.CompilerParams(
            dimension_semantics=("parallel",),
            vmem_limit_bytes=vmem_limit),
    )(x2, y2)

    total = jnp.sum(partials, dtype=jnp.float32)
    if reduction == "mean":
        return total / jnp.float32(total_elems)
    return total


def stft_magnitude_loss_ref(x_mag, y_mag, *, log=True, log_eps=0.0,
                            log_fac=1.0, distance="L1", reduction="mean"):
    x = x_mag.astype(jnp.float32)
    y = y_mag.astype(jnp.float32)
    if log:
        x = jnp.log(log_fac * x + log_eps)
        y = jnp.log(log_fac * y + log_eps)
    d = jnp.abs(x - y) if distance == "L1" else (x - y) ** 2
    return jnp.mean(d) if reduction == "mean" else jnp.sum(d)


if __name__ == "__main__":
    key = jax.random.PRNGKey(0)
    k1, k2 = jax.random.split(key)

    # STFT magnitudes: (batch, freq_bins, frames), strictly positive.
    B, F, T = 2, 64, 128
    x_mag = jnp.abs(jax.random.normal(k1, (B, F, T), dtype=jnp.float32)) + 1e-3
    y_mag = jnp.abs(jax.random.normal(k2, (B, F, T), dtype=jnp.float32)) + 1e-3

    # Default config: log=True, log_eps=0, log_fac=1, L1, mean (fused-log path).
    loss = jax.block_until_ready(stft_magnitude_loss(x_mag, y_mag))
    ref = stft_magnitude_loss_ref(x_mag, y_mag)
    assert jnp.allclose(loss, ref, rtol=1e-5, atol=1e-5), (loss, ref)

    # L2 path.
    loss_l2 = jax.block_until_ready(
        stft_magnitude_loss(x_mag, y_mag, distance="L2"))
    ref_l2 = stft_magnitude_loss_ref(x_mag, y_mag, distance="L2")
    assert jnp.allclose(loss_l2, ref_l2, rtol=1e-5, atol=1e-5), (loss_l2, ref_l2)

    # Non-fused log path (log_eps > 0, log_fac != 1) with 'sum' reduction.
    loss_eps = jax.block_until_ready(
        stft_magnitude_loss(x_mag, y_mag, log_eps=1.0, log_fac=2.0,
                            reduction="sum"))
    ref_eps = stft_magnitude_loss_ref(x_mag, y_mag, log_eps=1.0, log_fac=2.0,
                                      reduction="sum")
    assert jnp.allclose(loss_eps, ref_eps, rtol=1e-5, atol=1e-4), (loss_eps, ref_eps)

    # Linear (no log) path with bf16 inputs streamed in their native dtype.
    x_bf, y_bf = x_mag.astype(jnp.bfloat16), y_mag.astype(jnp.bfloat16)
    loss_lin = jax.block_until_ready(
        stft_magnitude_loss(x_bf, y_bf, log=False))
    ref_lin = stft_magnitude_loss_ref(x_bf, y_bf, log=False)
    assert jnp.allclose(loss_lin, ref_lin, rtol=1e-3, atol=1e-3), (loss_lin, ref_lin)

    print("KERNEL_OK")
</pallas_src>

<mosaic_0001>
module attributes {stable_mosaic.version = 11 : i64} {
  func.func @_stft_mag_loss_kernel(%arg0: i32, %arg1: memref<128x128xf32, #tpu.memory_space<vmem>>, %arg2: memref<128x128xf32, #tpu.memory_space<vmem>>, %arg3: memref<8x128xf32, #tpu.memory_space<vmem>>) attributes {dimension_semantics = [#tpu.dimension_semantics<parallel>], iteration_bounds = array<i64: 1>, scalar_prefetch = 0 : i64, scratch_operands = 0 : i64, tpu.core_type = #tpu.core_type<tc>, window_params = [{transform_indices = @transform_0, window_bounds = array<i64: 128, 128>}, {transform_indices = @transform_1, window_bounds = array<i64: 128, 128>}, {transform_indices = @transform_2, window_bounds = array<i64: 8, 128>}]} {
    %c0 = arith.constant 0 : index
    %c0_0 = arith.constant 0 : index
    %0 = vector.load %arg1[%c0, %c0_0] : memref<128x128xf32, #tpu.memory_space<vmem>>, vector<128x128xf32>
    %c0_1 = arith.constant 0 : index
    %c0_2 = arith.constant 0 : index
    %1 = vector.load %arg2[%c0_1, %c0_2] : memref<128x128xf32, #tpu.memory_space<vmem>>, vector<128x128xf32>
    %2 = arith.divf %0, %1 : vector<128x128xf32>
    %3 = math.log %2 : vector<128x128xf32>
    %4 = math.absf %3 : vector<128x128xf32>
    %5 = vector.shape_cast %4 : vector<128x128xf32> to vector<16x8x128xf32>
    %cst = arith.constant dense<0.000000e+00> : vector<8x128xf32>
    %6 = vector.multi_reduction <add>, %5, %cst [0] : vector<16x8x128xf32> to vector<8x128xf32>
    %c0_3 = arith.constant 0 : index
    %c0_4 = arith.constant 0 : index
    %7 = vector.load %arg3[%c0_3, %c0_4] : memref<8x128xf32, #tpu.memory_space<vmem>>, vector<8x128xf32>
    tpu.vector_store %arg3[%c0_3, %c0_4], %6 {strides = array<i32>} : memref<8x128xf32, #tpu.memory_space<vmem>>, vector<8x128xf32>,
    return
  }
  func.func @transform_0(%arg0: i32) -> (i32, i32) {
    %c0_i32 = arith.constant 0 : i32
    %c0_i32_0 = arith.constant 0 : i32
    return %arg0, %c0_i32 : i32, i32
  }
  func.func @transform_1(%arg0: i32) -> (i32, i32) {
    %c0_i32 = arith.constant 0 : i32
    %c0_i32_0 = arith.constant 0 : i32
    return %arg0, %c0_i32 : i32, i32
  }
  func.func @transform_2(%arg0: i32) -> (i32, i32) {
    %c0_i32 = arith.constant 0 : i32
    %c0_i32_0 = arith.constant 0 : i32
    return %arg0, %c0_i32 : i32, i32
  }
}

</mosaic_0001>

<bundles_post_ra>
// kernel: tpu_custom_call.1
= control target key start
LH: loop header
LB: loop body
LE: loop exit
PB: predicated region body
PF: predicated region fallthrough
CT: control target
= control target key end

     0   :  { %7 = vsyncpa [#allocation3], 0  ;;  %s348_s0 = inlined_call_operand.hbm [shape: f32[128,128], index: 0, kind: input, shape index: {}]   ;;  %s349_s1 = inlined_call_operand.hbm [shape: f32[128,128], index: 1, kind: input, shape index: {}]   ;;  %s350_s2 = inlined_call_operand.hbm [shape: f32[8,128], index: 2, kind: output, shape index: {}]  }
   0x1   :  { %8 = vsyncpa [#allocation6], 0 }
   0x2   :  { %9 = vsyncpa [#allocation4], 0  ;;  %s319_s9 = smov [#allocation2]  }
   0x3   :  { %s15_s10 = sshll.u32 %s319_s9, 4  ;;  %s16_s10 = int_to_ptr.vmem [resolvable:$true] %s15_s10 }
   0x4   :  { %s261_s11 = scalar_lea.vmem %s16_s10, 2048  ;;  %p266_p1 = scmp.lt.s32.totalorder %s16_s10, %s16_s10 }
   0x5   :  { %p262_p0 = scmp.ne.s32.totalorder %s16_s10, %s261_s11  ;;  %p267_p2 = scmp.lt.s32.totalorder %s261_s11, %s261_s11 }
   0x7   :  { %p268_p3 = por %p267_p2, %p266_p1 }
   0x9   :  { %p269_p4 = pnand %p268_p3, %p262_p0 }
   0xb   :  { %272 = shalt.err (!%p269_p4)
}
   0xc   :  { %s320_s12 = smov 128   ;;  %s321_s13 = smov 8  }
   0xd   :  { %21 = dma.hbm_to_vmem [thread:$0]  %s348_s0, 2048, %s16_s10, [#allocation3], %s320_s12, %s320_s12, %s321_s13  }
   0xe   :  { %s322_s16 = smov [#allocation5]  }
   0xf   :  { %s27_s17 = sshll.u32 %s322_s16, 4  ;;  %s28_s17 = int_to_ptr.vmem [resolvable:$true] %s27_s17 }
  0x10   :  { %s281_s18 = scalar_lea.vmem %s28_s17, 2048  ;;  %p286_p6 = scmp.lt.s32.totalorder %s28_s17, %s28_s17 }
  0x11   :  { %p282_p5 = scmp.ne.s32.totalorder %s28_s17, %s281_s18  ;;  %p287_p7 = scmp.lt.s32.totalorder %s281_s18, %s281_s18 }
  0x13   :  { %p288_p8 = por %p287_p7, %p286_p6 }
  0x15   :  { %p289_p9 = pnand %p288_p8, %p282_p5 }
  0x17   :  { %292 = shalt.err (!%p289_p9)
}
  0x18   :  { %33 = dma.hbm_to_vmem [thread:$0]  %s349_s1, 2048, %s28_s17, [#allocation6], %s320_s12, %s320_s12, %s321_s13  }
  0x19   :  { %313 = dma.done.wait [#allocation3], 2048  }
  0x1a   :  { %314 = vsyncadd [#allocation3], 4294965248 }
  0x1b   :  { %315 = dma.done.wait [#allocation6], 2048  }
  0x1c   :  { %316 = vsyncadd [#allocation6], 4294965248  ;;  %v56_v0 = vld [vmem:[#allocation5] sm:$0xff]  ;;  %v57_v1 = vld [vmem:[#allocation5 + $0x8] sm:$0xff]  ;;  %s323_s0 = smov [#allocation7]  }
  0x1d   :  { %v58_v2 = vld [vmem:[#allocation5 + $0x10] sm:$0xff]  ;;  %v59_v3 = vld [vmem:[#allocation5 + $0x18] sm:$0xff]  ;;  %189 = vrcp.f32 %v56_v0  ;;  %v60_v4 = vld [vmem:[#allocation5 + $0x20] sm:$0xff]  ;;  %s174_s1 = sshll.u32 %s323_s0, 4  ;;  %s175_s1 = int_to_ptr.vmem [resolvable:$true] %s174_s1 }
  0x1e   :  { %191 = vrcp.f32 %v57_v1  ;;  %v61_v5 = vld [vmem:[#allocation5 + $0x28] sm:$0xff]  ;;  %v62_v6 = vld [vmem:[#allocation5 + $0x30] sm:$0xff]  ;;  %v63_v7 = vld [vmem:[#allocation5 + $0x38] sm:$0xff]  ;;  %s293_s21 = scalar_lea.vmem %s175_s1, 128  ;;  %p298_p11 = scmp.lt.s32.totalorder %s175_s1, %s175_s1 }
  0x1f   :  { %193 = vrcp.f32 %v58_v2  ;;  %v64_v8 = vld [vmem:[#allocation5 + $0x40] sm:$0xff]  ;;  %v65_v9 = vld [vmem:[#allocation5 + $0x48] sm:$0xff]  ;;  %v66_v10 = vld [vmem:[#allocation5 + $0x50] sm:$0xff]  ;;  %p294_p10 = scmp.ne.s32.totalorder %s175_s1, %s293_s21  ;;  %p299_p12 = scmp.lt.s32.totalorder %s293_s21, %s293_s21 }
  0x20   :  { %195 = vrcp.f32 %v59_v3  ;;  %v67_v11 = vld [vmem:[#allocation5 + $0x58] sm:$0xff]  ;;  %v68_v12 = vld [vmem:[#allocation5 + $0x60] sm:$0xff]  ;;  %v69_v13 = vld [vmem:[#allocation5 + $0x68] sm:$0xff] }
  0x21   :  { %197 = vrcp.f32 %v60_v4  ;;  %v40_v14 = vld [vmem:[#allocation2] sm:$0xff]  ;;  %v70_v15 = vld [vmem:[#allocation5 + $0x70] sm:$0xff]  ;;  %v41_v16 = vld [vmem:[#allocation2 + $0x8] sm:$0xff]  ;;  %p300_p13 = por %p299_p12, %p298_p11 }
  0x22   :  { %199 = vrcp.f32 %v61_v5  ;;  %v71_v17 = vld [vmem:[#allocation5 + $0x78] sm:$0xff]  ;;  %v42_v19 = vld [vmem:[#allocation2 + $0x10] sm:$0xff]  ;;  %v44_v24 = vld [vmem:[#allocation2 + $0x20] sm:$0xff] }
  0x23   :  { %201 = vrcp.f32 %v62_v6  ;;  %v43_v21 = vld [vmem:[#allocation2 + $0x18] sm:$0xff]  ;;  %v45_v27 = vld [vmem:[#allocation2 + $0x28] sm:$0xff]  ;;  %v46_v30 = vld [vmem:[#allocation2 + $0x30] sm:$0xff]  ;;  %p301_p0 = pnand %p300_p13, %p294_p10 }
  0x24   :  { %203 = vrcp.f32 %v63_v7  ;;  %v47_v33 = vld [vmem:[#allocation2 + $0x38] sm:$0xff]  ;;  %v48_v36 = vld [vmem:[#allocation2 + $0x40] sm:$0xff]  ;;  %v49_v39 = vld [vmem:[#allocation2 + $0x48] sm:$0xff] }
  0x25   :  { %205 = vrcp.f32 %v64_v8  ;;  %v50_v44 = vld [vmem:[#allocation2 + $0x50] sm:$0xff]  ;;  %v51_v49 = vld [vmem:[#allocation2 + $0x58] sm:$0xff]  ;;  %v52_v53 = vld [vmem:[#allocation2 + $0x60] sm:$0xff] }
  0x26   :  { %207 = vrcp.f32 %v65_v9  ;;  %v53_v57 = vld [vmem:[#allocation2 + $0x68] sm:$0xff]  ;;  %v54_v61 = vld [vmem:[#allocation2 + $0x70] sm:$0xff]  ;;  %v55_v0 = vld [vmem:[#allocation2 + $0x78] sm:$0xff] }
  0x27   :  { %209 = vrcp.f32 %v66_v10 }
  0x28   :  { %211 = vrcp.f32 %v67_v11 }
  0x29   :  { %213 = vrcp.f32 %v68_v12 }
  0x2a   :  { %v190_v18 = vpop.eup %189  ;;  %215 = vrcp.f32 %v69_v13 }
  0x2b   :  { %v192_v20 = vpop.eup %191  ;;  %v73_v22 = vmul.f32 %v190_v18, %v40_v14  ;;  %217 = vrcp.f32 %v70_v15 }
  0x2c   :  { %v194_v23 = vpop.eup %193  ;;  %v75_v25 = vmul.f32 %v192_v20, %v41_v16  ;;  %219 = vrcp.f32 %v71_v17 }
  0x2d   :  { %v196_v26 = vpop.eup %195  ;;  %v77_v28 = vmul.f32 %v194_v23, %v42_v19  ;;  %221 = vlog2.f32 %v73_v22 }
  0x2e   :  { %v198_v29 = vpop.eup %197  ;;  %v79_v31 = vmul.f32 %v196_v26, %v43_v21  ;;  %223 = vlog2.f32 %v75_v25 }
  0x2f   :  { %v200_v32 = vpop.eup %199  ;;  %v81_v34 = vmul.f32 %v198_v29, %v44_v24  ;;  %225 = vlog2.f32 %v77_v28 }
  0x30   :  { %v202_v35 = vpop.eup %201  ;;  %v83_v37 = vmul.f32 %v200_v32, %v45_v27  ;;  %227 = vlog2.f32 %v79_v31 }
  0x31   :  { %v204_v38 = vpop.eup %203  ;;  %v85_v40 = vmul.f32 %v202_v35, %v46_v30  ;;  %229 = vlog2.f32 %v81_v34 }
  0x32   :  { %v206_v41 = vpop.eup %205  ;;  %v87_v42 = vmul.f32 %v204_v38, %v47_v33  ;;  %231 = vlog2.f32 %v83_v37 }
  0x33   :  { %v208_v43 = vpop.eup %207  ;;  %v89_v45 = vmul.f32 %v206_v41, %v48_v36  ;;  %233 = vlog2.f32 %v85_v40 }
  0x34   :  { %v210_v46 = vpop.eup %209  ;;  %v91_v47 = vmul.f32 %v208_v43, %v49_v39  ;;  %235 = vlog2.f32 %v87_v42 }
  0x35   :  { %v212_v48 = vpop.eup %211  ;;  %v93_v51 = vmul.f32 %v210_v46, %v50_v44  ;;  %237 = vlog2.f32 %v89_v45 }
  0x36   :  { %v214_v50 = vpop.eup %213  ;;  %v95_v55 = vmul.f32 %v212_v48, %v51_v49  ;;  %239 = vlog2.f32 %v91_v47 }
  0x37   :  { %v216_v52 = vpop.eup %215  ;;  %v97_v59 = vmul.f32 %v214_v50, %v52_v53  ;;  %241 = vlog2.f32 %v93_v51 }
  0x38   :  { %v218_v54 = vpop.eup %217  ;;  %v99_v1 = vmul.f32 %v216_v52, %v53_v57  ;;  %243 = vlog2.f32 %v95_v55 }
  0x39   :  { %v220_v56 = vpop.eup %219  ;;  %v101_v7 = vmul.f32 %v218_v54, %v54_v61  ;;  %245 = vlog2.f32 %v97_v59 }
  0x3a   :  { %v222_v58 = vpop.eup %221  ;;  %v103_v11 = vmul.f32 %v220_v56, %v55_v0  ;;  %247 = vlog2.f32 %v99_v1 }
  0x3b   :  { %v224_v60 = vpop.eup %223  ;;  %v105_v62 = vmul.f32 0.6931472, %v222_v58  ;;  %249 = vlog2.f32 %v101_v7 }
  0x3c   :  { %v226_v63 = vpop.eup %225  ;;  %v107_v2 = vmul.f32 0.6931472, %v224_v60  ;;  %251 = vlog2.f32 %v103_v11 }
  0x3d   :  { %v228_v3 = vpop.eup %227  ;;  %v109_v4 = vmul.f32 0.6931472, %v226_v63  ;;  %v136_v5 = vand.u32 2147483647, %v105_v62 }
  0x3e   :  { %v230_v6 = vpop.eup %229  ;;  %v111_v8 = vmul.f32 0.6931472, %v228_v3  ;;  %v137_v9 = vand.u32 2147483647, %v107_v2 }
  0x3f   :  { %v232_v10 = vpop.eup %231  ;;  %v113_v12 = vmul.f32 0.6931472, %v230_v6  ;;  %v138_v13 = vand.u32 2147483647, %v109_v4 }
  0x40   :  { %v234_v14 = vpop.eup %233  ;;  %v115_v15 = vmul.f32 0.6931472, %v232_v10  ;;  %v139_v16 = vand.u32 2147483647, %v111_v8  ;;  %v152_v17 = vadd.f32 %v137_v9, %v136_v5 }
  0x41   :  { %v236_v18 = vpop.eup %235  ;;  %v117_v19 = vmul.f32 0.6931472, %v234_v14  ;;  %v140_v20 = vand.u32 2147483647, %v113_v12 }
  0x42   :  { %v153_v21 = vadd.f32 %v152_v17, %v138_v13  ;;  %v238_v22 = vpop.eup %237  ;;  %v119_v23 = vmul.f32 0.6931472, %v236_v18  ;;  %v141_v24 = vand.u32 2147483647, %v115_v15 }
  0x43   :  { %v240_v26 = vpop.eup %239  ;;  %v121_v27 = vmul.f32 0.6931472, %v238_v22  ;;  %v142_v28 = vand.u32 2147483647, %v117_v19 }
  0x44   :  { %v154_v25 = vadd.f32 %v153_v21, %v139_v16  ;;  %v242_v30 = vpop.eup %241  ;;  %v123_v31 = vmul.f32 0.6931472, %v240_v26  ;;  %v143_v32 = vand.u32 2147483647, %v119_v23 }
  0x45   :  { %v244_v34 = vpop.eup %243  ;;  %v125_v35 = vmul.f32 0.6931472, %v242_v30  ;;  %v144_v36 = vand.u32 2147483647, %v121_v27 }
  0x46   :  { %v155_v29 = vadd.f32 %v154_v25, %v140_v20  ;;  %v246_v38 = vpop.eup %245  ;;  %v127_v39 = vmul.f32 0.6931472, %v244_v34  ;;  %v145_v40 = vand.u32 2147483647, %v123_v31 }
  0x47   :  { %v248_v42 = vpop.eup %247  ;;  %v129_v43 = vmul.f32 0.6931472, %v246_v38  ;;  %v146_v44 = vand.u32 2147483647, %v125_v35 }
  0x48   :  { %v156_v33 = vadd.f32 %v155_v29, %v141_v24  ;;  %v250_v46 = vpop.eup %249  ;;  %v131_v47 = vmul.f32 0.6931472, %v248_v42  ;;  %v147_v48 = vand.u32 2147483647, %v127_v39 }
  0x49   :  { %v252_v50 = vpop.eup %251  ;;  %v133_v51 = vmul.f32 0.6931472, %v250_v46  ;;  %v148_v52 = vand.u32 2147483647, %v129_v43 }
  0x4a   :  { %v157_v37 = vadd.f32 %v156_v33, %v142_v28  ;;  %v135_v54 = vmul.f32 0.6931472, %v252_v50  ;;  %v149_v55 = vand.u32 2147483647, %v131_v47 }
  0x4b   :  { %v150_v57 = vand.u32 2147483647, %v133_v51 }
  0x4c   :  { %v158_v41 = vadd.f32 %v157_v37, %v143_v32  ;;  %v151_v59 = vand.u32 2147483647, %v135_v54 }
  0x4e   :  { %v159_v45 = vadd.f32 %v158_v41, %v144_v36 }
  0x50   :  { %v160_v49 = vadd.f32 %v159_v45, %v145_v40 }
  0x52   :  { %v161_v53 = vadd.f32 %v160_v49, %v146_v44 }
  0x54   :  { %v162_v56 = vadd.f32 %v161_v53, %v147_v48 }
  0x56   :  { %v163_v58 = vadd.f32 %v162_v56, %v148_v52 }
  0x58   :  { %v164_v60 = vadd.f32 %v163_v58, %v149_v55 }
  0x5a   :  { %v165_v61 = vadd.f32 %v164_v60, %v150_v57 }
  0x5c   :  { %v166_v62 = vadd.f32 %v165_v61, %v151_v59 }
  0x5e   :  { %167 = vst [vmem:[#allocation7] sm:$0xff] %v166_v62 }
  0x5f   :  { %304 = shalt.err (!%p301_p0)
}
  0x60   :  { %177 = dma.vmem_to_hbm [thread:$0]  %s175_s1, 128, %s350_s2, [#allocation4]  }
  0x61   :  { %317 = dma.done.wait [#allocation4], 128  }
  0x62   :  { %318 = vsyncadd [#allocation4], 4294967168 }
  0x63   :  { %181 = vsyncpa [#allocation3], 1 }
  0x64   :  { %182 = vsyncpa [#allocation6], 1 }
  0x65   :  { %183 = vsyncpa [#allocation4], 1 }

</bundles_post_ra>
